<compile_context>
chip_gen: v5e
topology: v5e:2x2
jax: 0.10.0
libtpu: 0.0.40
codegen_flags: <defaults>
</compile_context>

<pallas_src>
import jax
import jax.numpy as jnp
import numpy as np
from jax.experimental import pallas as pl
from jax.experimental.pallas import tpu as pltpu


# ----------------------------------------------------------------------------
# Setup-time parameter preparation (hoisted out of the per-forward path).
# ----------------------------------------------------------------------------
def _spectral_normalize(w, n_iter=30, eps=1e-12):
    """PyTorch spectral_norm for Conv2d (dim=0): view weight as (out, -1).

    PyTorch keeps a running `u` with one power iteration per training forward;
    here a converged deterministic iteration runs once at setup (inference)."""
    w = w.astype(jnp.float32)
    wmat = w.reshape(w.shape[0], -1)
    v0 = jnp.ones((wmat.shape[1],), jnp.float32) / jnp.sqrt(jnp.float32(wmat.shape[1]))

    def body(_, v):
        u = wmat @ v
        u = u / (jnp.linalg.norm(u) + eps)
        v = wmat.T @ u
        v = v / (jnp.linalg.norm(v) + eps)
        return v

    v = jax.lax.fori_loop(0, n_iter, body, v0)
    u = wmat @ v
    u = u / (jnp.linalg.norm(u) + eps)
    sigma = u @ (wmat @ v)
    return w / sigma


def prepare_se_params(w1, w2):
    """w1 (C_out, C_in, 4, 4), w2 (C_out, C_out, 1, 1) -> MXU-ready bf16 weights:
         w1r (16*C_in, C_out)  rows ordered (c, i, j) to match the pooled flatten,
         w2t (C_out, C_out)    transposed 1x1 conv weight."""
    w1sn = _spectral_normalize(w1)
    w2sn = _spectral_normalize(w2)
    c_out, c_in = w1.shape[0], w1.shape[1]
    w1r = w1sn.reshape(c_out, c_in * 16).T.astype(jnp.bfloat16)   # (16*C_in, C_out)
    w2t = w2sn[:, :, 0, 0].T.astype(jnp.bfloat16)                 # (C_out, C_out)
    return w1r, w2t


# ----------------------------------------------------------------------------
# Kernel 1: squeeze path  ->  gate (B, C_out), single grid-less invocation.
# ----------------------------------------------------------------------------
def _se_gate_kernel(pooled_ref, w1_ref, w2t_ref, gate_ref):
    # 4x4 conv as one bf16 MXU matmul with a real contraction dim K = 16*C_in.
    pooled = pooled_ref[...].astype(jnp.bfloat16)                  # (B, 16*C_in)
    y = jnp.dot(pooled, w1_ref[...], preferred_element_type=jnp.float32)
    y = y * jax.nn.sigmoid(y)                                      # Swish (f32)
    y = jnp.dot(y.astype(jnp.bfloat16), w2t_ref[...],              # 1x1 conv
                preferred_element_type=jnp.float32)
    gate_ref[...] = jax.nn.sigmoid(y).astype(gate_ref.dtype)       # (B, C_out)


# ----------------------------------------------------------------------------
# Kernel 2: excite  ->  feat_big * gate   (memory-bound element-wise multiply)
# ----------------------------------------------------------------------------
def _se_excite_kernel(big_ref, gate_ref, out_ref):
    out_ref[...] = (big_ref[...] * gate_ref[...]).astype(out_ref.dtype)


def _excite_tiles(rows, cols, itemsize):
    """Lane-dense tiles, ~4 MiB each (<= ~20 MiB double-buffered in+out): big enough
    to amortize per-step overhead on v5e/v6e, small enough for v7x's 64 MiB VMEM."""
    tile_r = rows if rows <= 256 else 256
    col_cap = max(128, ((4 * 1024 * 1024) // (256 * itemsize)) // 128 * 128)
    tile_c = cols if cols <= col_cap else col_cap
    # Guarantee >=2 tiles along a "parallel" axis so both v7x TensorCores get work.
    if pl.cdiv(rows, tile_r) * pl.cdiv(cols, tile_c) == 1:
        if cols >= 256:
            tile_c = ((cols // 2 + 127) // 128) * 128
        elif rows >= 16:
            tile_r = ((rows // 2 + 7) // 8) * 8
    return tile_r, tile_c


# ----------------------------------------------------------------------------
# Forward wrapper
# ----------------------------------------------------------------------------
def se_block_forward(feat_small, feat_big, w1r, w2t):
    """feat_small (B, C_in, Hs, Ws); feat_big (B, C_out, Hb, Wb);
    w1r (16*C_in, C_out) bf16; w2t (C_out, C_out) bf16 (from prepare_se_params)."""
    B, C_in, Hs, Ws = feat_small.shape
    Bb, C_out, Hb, Wb = feat_big.shape
    assert Bb == B
    # TODO(synk): AdaptiveAvgPool2d(4) with Hs/Ws not divisible by 4 uses ragged bins;
    # only the uniform-window case (the usual FastGAN sizes) is implemented.
    assert Hs % 4 == 0 and Ws % 4 == 0, "feat_small spatial must be divisible by 4"
    kh, kw = Hs // 4, Ws // 4

    # ---- squeeze: AdaptiveAvgPool2d(4) as a tiny XLA reduce (per perf review),
    # then ONE grid-less Pallas call for conv4x4 -> Swish -> conv1x1 -> sigmoid.
    pooled = feat_small.reshape(B, C_in, 4, kh, 4, kw).mean(axis=(3, 5))  # (B, C_in, 4, 4)
    pooled_flat = pooled.reshape(B, C_in * 16)                            # (c, i, j) order

    gate = pl.pallas_call(
        _se_gate_kernel,
        out_shape=jax.ShapeDtypeStruct((B, C_out), feat_big.dtype),
    )(pooled_flat, w1r, w2t)

    # ---- excite: feat_big * gate, tiled, lane-dense last dim ----
    rows, cols = B * C_out, Hb * Wb
    big2 = feat_big.reshape(rows, cols)            # free reshape (NCHW row-major)
    gate2 = gate.reshape(rows, 1)
    item = feat_big.dtype.itemsize
    tile_r, tile_c = _excite_tiles(rows, cols, item)
    grid = (pl.cdiv(rows, tile_r), pl.cdiv(cols, tile_c))
    vmem_limit = int(min(56 * 2**20, max(32 * 2**20,
                                         4 * tile_r * tile_c * item + (4 << 20))))

    out2 = pl.pallas_call(
        _se_excite_kernel,
        out_shape=jax.ShapeDtypeStruct((rows, cols), feat_big.dtype),
        grid_spec=pltpu.PrefetchScalarGridSpec(
            num_scalar_prefetch=0,
            grid=grid,
            in_specs=[
                pl.BlockSpec((tile_r, tile_c), lambda i, j: (i, j)),
                pl.BlockSpec((tile_r, 1), lambda i, j: (i, 0)),
            ],
            out_specs=pl.BlockSpec((tile_r, tile_c), lambda i, j: (i, j)),
        ),
        compiler_params=pltpu.CompilerParams(
            dimension_semantics=("parallel", "parallel"),
            vmem_limit_bytes=vmem_limit),
    )(big2, gate2)

    return out2.reshape(B, C_out, Hb, Wb)


se_block_forward = jax.jit(se_block_forward)


# ----------------------------------------------------------------------------
# Pure-JAX reference of the PyTorch forward (same prepared bf16 weights, f32 math).
# ----------------------------------------------------------------------------
def _reference(feat_small, feat_big, w1r, w2t):
    B, C_in, Hs, Ws = feat_small.shape
    kh, kw = Hs // 4, Ws // 4
    x = feat_small.astype(jnp.float32)
    pooled = x.reshape(B, C_in, 4, kh, 4, kw).mean(axis=(3, 5)).reshape(B, C_in * 16)
    y = jnp.dot(pooled, w1r.astype(jnp.float32), precision="highest")   # 4x4 conv, valid
    y = y * jax.nn.sigmoid(y)                                           # Swish
    y = jnp.dot(y, w2t.astype(jnp.float32), precision="highest")        # 1x1 conv
    gate = jax.nn.sigmoid(y)                                            # (B, C_out)
    return feat_big * gate[:, :, None, None]


if __name__ == "__main__":
    key = jax.random.PRNGKey(0)
    k1, k2, k3, k4 = jax.random.split(key, 4)

    B, ch_in, ch_out = 2, 32, 16
    Hs = Ws = 16          # feat_small spatial
    Hb = Wb = 64          # feat_big spatial

    feat_small = jax.random.normal(k1, (B, ch_in, Hs, Ws), dtype=jnp.float32)
    feat_big = jax.random.normal(k2, (B, ch_out, Hb, Wb), dtype=jnp.float32)
    w1 = 0.1 * jax.random.normal(k3, (ch_out, ch_in, 4, 4), dtype=jnp.float32)
    w2 = 0.1 * jax.random.normal(k4, (ch_out, ch_out, 1, 1), dtype=jnp.float32)

    # One-time weight preparation (spectral norm + bf16 + MXU layout), hoisted.
    w1r, w2t = prepare_se_params(w1, w2)

    out = jax.block_until_ready(se_block_forward(feat_small, feat_big, w1r, w2t))
    ref = jax.block_until_ready(_reference(feat_small, feat_big, w1r, w2t))

    assert out.shape == (B, ch_out, Hb, Wb), out.shape
    np.testing.assert_allclose(np.asarray(out), np.asarray(ref), rtol=2e-3, atol=2e-3)

    print("KERNEL_OK")
</pallas_src>

<mosaic_0001>
module attributes {stable_mosaic.version = 11 : i64} {
  func.func @_se_gate_kernel(%arg0: memref<2x512xf32, #tpu.memory_space<vmem>>, %arg1: memref<512x16xbf16, #tpu.memory_space<vmem>>, %arg2: memref<16x16xbf16, #tpu.memory_space<vmem>>, %arg3: memref<2x16xf32, #tpu.memory_space<vmem>>) attributes {dimension_semantics = [], scalar_prefetch = 0 : i64, scratch_operands = 0 : i64, tpu.core_type = #tpu.core_type<tc>} {
    %c0 = arith.constant 0 : index
    %c0_0 = arith.constant 0 : index
    %0 = vector.load %arg0[%c0, %c0_0] : memref<2x512xf32, #tpu.memory_space<vmem>>, vector<2x512xf32>
    %1 = arith.truncf %0 : vector<2x512xf32> to vector<2x512xbf16>
    %c0_1 = arith.constant 0 : index
    %c0_2 = arith.constant 0 : index
    %2 = vector.load %arg1[%c0_1, %c0_2] : memref<512x16xbf16, #tpu.memory_space<vmem>>, vector<512x16xbf16>
    %cst = arith.constant dense<0.000000e+00> : vector<2x16xf32>
    %3 = tpu.matmul %1, %2, %cst {dimension_numbers = #tpu.dot_dimension_numbers<[1], [0], [0], [1], [0, 0, 1, 1], [], []>} : vector<2x512xbf16>, vector<512x16xbf16>, vector<2x16xf32> -> vector<2x16xf32>
    %4 = arith.negf %3 : vector<2x16xf32>
    %5 = math.exp %4 : vector<2x16xf32>
    %cst_3 = arith.constant 1.000000e+00 : f32
    %6 = vector.broadcast %cst_3 : f32 to vector<2x16xf32>
    %7 = arith.addf %6, %5 : vector<2x16xf32>
    %8 = arith.divf %6, %7 : vector<2x16xf32>
    %9 = arith.mulf %3, %8 : vector<2x16xf32>
    %10 = arith.truncf %9 : vector<2x16xf32> to vector<2x16xbf16>
    %c0_4 = arith.constant 0 : index
    %c0_5 = arith.constant 0 : index
    %11 = vector.load %arg2[%c0_4, %c0_5] : memref<16x16xbf16, #tpu.memory_space<vmem>>, vector<16x16xbf16>
    %cst_6 = arith.constant dense<0.000000e+00> : vector<2x16xf32>
    %12 = tpu.matmul %10, %11, %cst_6 {dimension_numbers = #tpu.dot_dimension_numbers<[1], [0], [0], [1], [0, 0, 1, 1], [], []>} : vector<2x16xbf16>, vector<16x16xbf16>, vector<2x16xf32> -> vector<2x16xf32>
    %13 = arith.negf %12 : vector<2x16xf32>
    %14 = math.exp %13 : vector<2x16xf32>
    %cst_7 = arith.constant 1.000000e+00 : f32
    %15 = vector.broadcast %cst_7 : f32 to vector<2x16xf32>
    %16 = arith.addf %15, %14 : vector<2x16xf32>
    %17 = arith.divf %15, %16 : vector<2x16xf32>
    %c0_8 = arith.constant 0 : index
    %c0_9 = arith.constant 0 : index
    %18 = vector.load %arg3[%c0_8, %c0_9] : memref<2x16xf32, #tpu.memory_space<vmem>>, vector<2x16xf32>
    tpu.vector_store %arg3[%c0_8, %c0_9], %17 {strides = array<i32>} : memref<2x16xf32, #tpu.memory_space<vmem>>, vector<2x16xf32>,
    return
  }
}

module attributes {stable_mosaic.version = 11 : i64} {
  func.func @_se_excite_kernel(%arg0: i32, %arg1: i32, %arg2: memref<32x2048xf32, #tpu.memory_space<vmem>>, %arg3: memref<32x1xf32, #tpu.memory_space<vmem>>, %arg4: memref<32x2048xf32, #tpu.memory_space<vmem>>) attributes {dimension_semantics = [#tpu.dimension_semantics<parallel>, #tpu.dimension_semantics<parallel>], iteration_bounds = array<i64: 1, 2>, scalar_prefetch = 0 : i64, scratch_operands = 0 : i64, tpu.core_type = #tpu.core_type<tc>, window_params = [{transform_indices = @transform_0, window_bounds = array<i64: 32, 2048>}, {transform_indices = @transform_1, window_bounds = array<i64: 32, 1>}, {transform_indices = @transform_2, window_bounds = array<i64: 32, 2048>}]} {
    %c0 = arith.constant 0 : index
    %c0_0 = arith.constant 0 : index
    %0 = vector.load %arg2[%c0, %c0_0] : memref<32x2048xf32, #tpu.memory_space<vmem>>, vector<32x2048xf32>
    %c0_1 = arith.constant 0 : index
    %c0_2 = arith.constant 0 : index
    %1 = vector.load %arg3[%c0_1, %c0_2] : memref<32x1xf32, #tpu.memory_space<vmem>>, vector<32x1xf32>
    %2 = vector.broadcast %1 : vector<32x1xf32> to vector<32x2048xf32>
    %3 = arith.mulf %0, %2 : vector<32x2048xf32>
    %c0_3 = arith.constant 0 : index
    %c0_4 = arith.constant 0 : index
    %4 = vector.load %arg4[%c0_3, %c0_4] : memref<32x2048xf32, #tpu.memory_space<vmem>>, vector<32x2048xf32>
    tpu.vector_store %arg4[%c0_3, %c0_4], %3 {strides = array<i32>} : memref<32x2048xf32, #tpu.memory_space<vmem>>, vector<32x2048xf32>,
    return
  }
  func.func @transform_0(%arg0: i32, %arg1: i32) -> (i32, i32) {
    %c0_i32 = arith.constant 0 : i32
    return %arg0, %arg1 : i32, i32
  }
  func.func @transform_1(%arg0: i32, %arg1: i32) -> (i32, i32) {
    %c0_i32 = arith.constant 0 : i32
    %c0_i32_0 = arith.constant 0 : i32
    return %arg0, %c0_i32 : i32, i32
  }
  func.func @transform_2(%arg0: i32, %arg1: i32) -> (i32, i32) {
    %c0_i32 = arith.constant 0 : i32
    return %arg0, %arg1 : i32, i32
  }
}

</mosaic_0001>

<bundles_post_ra>
// kernel: se_block_forward.3
= control target key start
LH: loop header
LB: loop body
LE: loop exit
PB: predicated region body
PF: predicated region fallthrough
CT: control target
= control target key end

     0   :  { %s904_s9 = smov 0   ;;  %s906_s10 = smov 0   ;;  %s1382_s0 = inlined_call_operand.vmem [shape: f32[32,4096], index: 0, kind: input, shape index: {}]   ;;  %s1383_s1 = inlined_call_operand.vmem [shape: f32[32,1], index: 1, kind: input, shape index: {}]   ;;  %s1384_s2 = inlined_call_operand.vmem [shape: f32[32,4096], index: 2, kind: output, shape index: {}]  }
   0x1   :  { %s908_s11 = smov 0   ;;  %s910_s12 = smov 0  }
   0x2   :  { %s912_s13 = smov 0  }
   0x3 LB: > { %s21_s14 = sadd.s32 1, %s882_s12  ;;  %s787_s15 = sadd.s32 4294967295, %s886_s13   ;;  %s886_s13 = sphi %s912_s13, %s12_s13   ;;  %s882_s12 = sphi %s910_s12, %s1389_s12   ;;  %s878_s11 = sphi %s908_s11, %s1388_s11   ;;  %s874_s10 = sphi %s906_s10, %s1387_s10   ;;  %s870_s9 = sphi %s904_s9, %s1386_s9  }
   0x4   : > { %p22_p0 = scmp.ge.s32.totalorder %s21_s14, 2  ;;  %p40_p1 = scmp.ne.s32.totalorder %s874_s10, %s870_s9 }
   0x5   : > { %p41_p2 = scmp.eq.s32.totalorder %s886_s13, 0  ;;  %p98_p4 = scmp.eq.s32.totalorder %s787_s15, 1 }
   0x6   : > { %s1391_s14 = smov (%p22_p0, %s21_s14), 0  ;;  %s33_s17 = sadd.s32 1, %s874_s10 }
   0x7   : > { %p42_p3 = por %p41_p2, %p40_p1  ;;  %s29_s16 = ssub.s32 %s882_s12, %s1391_s14 }
   0x8   : > { %p31_p5 = scmp.eq.s32.totalorder %s29_s16, 0  ;;  %p939_p6 = por %p98_p4, %p40_p1 }
   0x9   : > { %p791_p7 = scmp.ge.s32.totalorder %s886_s13, 2 }
   0xa   : > { %s944_s19 = scalar_select %p31_p5, %s874_s10, %s33_s17  }
   0xb   : > { %129 = sbr.rel (%p791_p7) target bundleno = 84 (0x54), region = 20 }
  0x10   : > { %132 = sbr.rel (!%p42_p3) target bundleno = 84 (0x54), region = 24  ;;  %s134_s20 = sand.u32 (%p42_p3), 1, %s874_s10  }
  0x11   : > { %s803_s21 = sshll.u32 (%p42_p3), %s882_s12, 7  ;;  %s792_s22 = sshll.u32 (%p42_p3), %s134_s20, 9 }
  0x12   : > { %s952_s25 = scalar_lea.vmem (%p42_p3), %s1382_s0, %s803_s21  ;;  %s957_s26 = scalar_lea.vmem (%p42_p3), [#allocation2], %s792_s22 }
  0x13   : > { %v155_v0 = vld [vmem:[%s952_s25] sm:$0xff] (%p42_p3)  ;;  %v157_v1 = vld [vmem:[%s952_s25 + $0x8] sm:$0xff] (%p42_p3)  ;;  %v159_v2 = vld [vmem:[%s952_s25 + $0x10] sm:$0xff] (%p42_p3) }
  0x14   : > { %156 = vst [vmem:[%s957_s26] sm:$0xff] (%p42_p3), %v155_v0  ;;  %v161_v3 = vld [vmem:[%s952_s25 + $0x18] sm:$0xff] (%p42_p3)  ;;  %v163_v4 = vld [vmem:[%s952_s25 + $0x20] sm:$0xff] (%p42_p3)  ;;  %v165_v5 = vld [vmem:[%s952_s25 + $0x28] sm:$0xff] (%p42_p3) }
  0x15   : > { %158 = vst [vmem:[%s957_s26 + $0x8] sm:$0xff] %v157_v1  ;;  %v167_v6 = vld [vmem:[%s952_s25 + $0x30] sm:$0xff]  ;;  %v169_v7 = vld [vmem:[%s952_s25 + $0x38] sm:$0xff]  ;;  %v171_v8 = vld [vmem:[%s952_s25 + $0x40] sm:$0xff] }
  0x16   : > { %160 = vst [vmem:[%s957_s26 + $0x10] sm:$0xff] %v159_v2  ;;  %v173_v9 = vld [vmem:[%s952_s25 + $0x48] sm:$0xff]  ;;  %v175_v10 = vld [vmem:[%s952_s25 + $0x50] sm:$0xff]  ;;  %v177_v11 = vld [vmem:[%s952_s25 + $0x58] sm:$0xff] }
  0x17   : > { %162 = vst [vmem:[%s957_s26 + $0x18] sm:$0xff] %v161_v3  ;;  %v179_v12 = vld [vmem:[%s952_s25 + $0x60] sm:$0xff]  ;;  %v181_v13 = vld [vmem:[%s952_s25 + $0x68] sm:$0xff]  ;;  %v183_v14 = vld [vmem:[%s952_s25 + $0x70] sm:$0xff] }
  0x18   : > { %164 = vst [vmem:[%s957_s26 + $0x20] sm:$0xff] %v163_v4  ;;  %v185_v15 = vld [vmem:[%s952_s25 + $0x78] sm:$0xff]  ;;  %v187_v16 = vld [vmem:[%s952_s25 + $0x100] sm:$0xff]  ;;  %v189_v17 = vld [vmem:[%s952_s25 + $0x108] sm:$0xff] }
  0x19   : > { %166 = vst [vmem:[%s957_s26 + $0x28] sm:$0xff] %v165_v5  ;;  %v191_v18 = vld [vmem:[%s952_s25 + $0x110] sm:$0xff]  ;;  %v193_v19 = vld [vmem:[%s952_s25 + $0x118] sm:$0xff]  ;;  %v195_v20 = vld [vmem:[%s952_s25 + $0x120] sm:$0xff] }
  0x1a   : > { %168 = vst [vmem:[%s957_s26 + $0x30] sm:$0xff] %v167_v6  ;;  %v197_v21 = vld [vmem:[%s952_s25 + $0x128] sm:$0xff]  ;;  %v199_v22 = vld [vmem:[%s952_s25 + $0x130] sm:$0xff]  ;;  %v201_v23 = vld [vmem:[%s952_s25 + $0x138] sm:$0xff] }
  0x1b   : > { %170 = vst [vmem:[%s957_s26 + $0x38] sm:$0xff] %v169_v7  ;;  %v203_v24 = vld [vmem:[%s952_s25 + $0x140] sm:$0xff]  ;;  %v205_v25 = vld [vmem:[%s952_s25 + $0x148] sm:$0xff]  ;;  %v207_v26 = vld [vmem:[%s952_s25 + $0x150] sm:$0xff] }
  0x1c   : > { %172 = vst [vmem:[%s957_s26 + $0x40] sm:$0xff] %v171_v8  ;;  %v209_v27 = vld [vmem:[%s952_s25 + $0x158] sm:$0xff]  ;;  %v211_v28 = vld [vmem:[%s952_s25 + $0x160] sm:$0xff]  ;;  %v213_v29 = vld [vmem:[%s952_s25 + $0x168] sm:$0xff] }
  0x1d   : > { %174 = vst [vmem:[%s957_s26 + $0x48] sm:$0xff] %v173_v9  ;;  %v215_v30 = vld [vmem:[%s952_s25 + $0x170] sm:$0xff]  ;;  %v217_v31 = vld [vmem:[%s952_s25 + $0x178] sm:$0xff]  ;;  %v219_v32 = vld [vmem:[%s952_s25 + $0x200] sm:$0xff] }
  0x1e   : > { %176 = vst [vmem:[%s957_s26 + $0x50] sm:$0xff] %v175_v10  ;;  %v221_v33 = vld [vmem:[%s952_s25 + $0x208] sm:$0xff]  ;;  %v223_v34 = vld [vmem:[%s952_s25 + $0x210] sm:$0xff]  ;;  %v225_v35 = vld [vmem:[%s952_s25 + $0x218] sm:$0xff] }
  0x1f   : > { %178 = vst [vmem:[%s957_s26 + $0x58] sm:$0xff] %v177_v11  ;;  %v227_v36 = vld [vmem:[%s952_s25 + $0x220] sm:$0xff]  ;;  %v229_v37 = vld [vmem:[%s952_s25 + $0x228] sm:$0xff]  ;;  %v231_v38 = vld [vmem:[%s952_s25 + $0x230] sm:$0xff] }
  0x20   : > { %180 = vst [vmem:[%s957_s26 + $0x60] sm:$0xff] %v179_v12  ;;  %v233_v39 = vld [vmem:[%s952_s25 + $0x238] sm:$0xff]  ;;  %v235_v40 = vld [vmem:[%s952_s25 + $0x240] sm:$0xff]  ;;  %v237_v41 = vld [vmem:[%s952_s25 + $0x248] sm:$0xff] }
  0x21   : > { %182 = vst [vmem:[%s957_s26 + $0x68] sm:$0xff] %v181_v13  ;;  %v239_v42 = vld [vmem:[%s952_s25 + $0x250] sm:$0xff]  ;;  %v241_v43 = vld [vmem:[%s952_s25 + $0x258] sm:$0xff]  ;;  %v243_v44 = vld [vmem:[%s952_s25 + $0x260] sm:$0xff] }
  0x22   : > { %184 = vst [vmem:[%s957_s26 + $0x70] sm:$0xff] %v183_v14  ;;  %v245_v45 = vld [vmem:[%s952_s25 + $0x268] sm:$0xff]  ;;  %v247_v46 = vld [vmem:[%s952_s25 + $0x270] sm:$0xff]  ;;  %v249_v47 = vld [vmem:[%s952_s25 + $0x278] sm:$0xff] }
  0x23   : > { %186 = vst [vmem:[%s957_s26 + $0x78] sm:$0xff] %v185_v15  ;;  %v251_v48 = vld [vmem:[%s952_s25 + $0x300] sm:$0xff]  ;;  %v253_v49 = vld [vmem:[%s952_s25 + $0x308] sm:$0xff]  ;;  %v255_v50 = vld [vmem:[%s952_s25 + $0x310] sm:$0xff] }
  0x24   : > { %188 = vst [vmem:[%s957_s26 + $0x80] sm:$0xff] %v187_v16  ;;  %v257_v51 = vld [vmem:[%s952_s25 + $0x318] sm:$0xff]  ;;  %v259_v52 = vld [vmem:[%s952_s25 + $0x320] sm:$0xff]  ;;  %v261_v53 = vld [vmem:[%s952_s25 + $0x328] sm:$0xff] }
  0x25   : > { %190 = vst [vmem:[%s957_s26 + $0x88] sm:$0xff] %v189_v17  ;;  %v263_v54 = vld [vmem:[%s952_s25 + $0x330] sm:$0xff]  ;;  %v265_v55 = vld [vmem:[%s952_s25 + $0x338] sm:$0xff]  ;;  %v267_v56 = vld [vmem:[%s952_s25 + $0x340] sm:$0xff] }
  0x26   : > { %192 = vst [vmem:[%s957_s26 + $0x90] sm:$0xff] %v191_v18  ;;  %v269_v57 = vld [vmem:[%s952_s25 + $0x348] sm:$0xff]  ;;  %v271_v58 = vld [vmem:[%s952_s25 + $0x350] sm:$0xff]  ;;  %v273_v59 = vld [vmem:[%s952_s25 + $0x358] sm:$0xff] }
  0x27   : > { %194 = vst [vmem:[%s957_s26 + $0x98] sm:$0xff] %v193_v19  ;;  %v275_v60 = vld [vmem:[%s952_s25 + $0x360] sm:$0xff]  ;;  %v277_v61 = vld [vmem:[%s952_s25 + $0x368] sm:$0xff]  ;;  %v279_v62 = vld [vmem:[%s952_s25 + $0x370] sm:$0xff] }
  0x28   : > { %196 = vst [vmem:[%s957_s26 + $0xa0] sm:$0xff] %v195_v20  ;;  %v281_v63 = vld [vmem:[%s952_s25 + $0x378] sm:$0xff] }
  0x29   : > { %198 = vst [vmem:[%s957_s26 + $0xa8] sm:$0xff] %v197_v21 }
  0x2a   : > { %200 = vst [vmem:[%s957_s26 + $0xb0] sm:$0xff] %v199_v22 }
  0x2b   : > { %202 = vst [vmem:[%s957_s26 + $0xb8] sm:$0xff] %v201_v23 }
  0x2c   : > { %204 = vst [vmem:[%s957_s26 + $0xc0] sm:$0xff] %v203_v24 }
  0x2d   : > { %206 = vst [vmem:[%s957_s26 + $0xc8] sm:$0xff] %v205_v25 }
  0x2e   : > { %208 = vst [vmem:[%s957_s26 + $0xd0] sm:$0xff] %v207_v26 }
  0x2f   : > { %210 = vst [vmem:[%s957_s26 + $0xd8] sm:$0xff] %v209_v27 }
  0x30   : > { %212 = vst [vmem:[%s957_s26 + $0xe0] sm:$0xff] %v211_v28 }
  0x31   : > { %214 = vst [vmem:[%s957_s26 + $0xe8] sm:$0xff] %v213_v29 }
  0x32   : > { %216 = vst [vmem:[%s957_s26 + $0xf0] sm:$0xff] %v215_v30 }
  0x33   : > { %218 = vst [vmem:[%s957_s26 + $0xf8] sm:$0xff] %v217_v31 }
  0x34   : > { %220 = vst [vmem:[%s957_s26 + $0x100] sm:$0xff] %v219_v32 }
  0x35   : > { %222 = vst [vmem:[%s957_s26 + $0x108] sm:$0xff] %v221_v33 }
  0x36   : > { %224 = vst [vmem:[%s957_s26 + $0x110] sm:$0xff] %v223_v34 }
  0x37   : > { %226 = vst [vmem:[%s957_s26 + $0x118] sm:$0xff] %v225_v35 }
  0x38   : > { %228 = vst [vmem:[%s957_s26 + $0x120] sm:$0xff] %v227_v36 }
  0x39   : > { %230 = vst [vmem:[%s957_s26 + $0x128] sm:$0xff] %v229_v37 }
  0x3a   : > { %232 = vst [vmem:[%s957_s26 + $0x130] sm:$0xff] %v231_v38 }
  0x3b   : > { %234 = vst [vmem:[%s957_s26 + $0x138] sm:$0xff] %v233_v39 }
  0x3c   : > { %236 = vst [vmem:[%s957_s26 + $0x140] sm:$0xff] %v235_v40 }
  0x3d   : > { %238 = vst [vmem:[%s957_s26 + $0x148] sm:$0xff] %v237_v41 }
  0x3e   : > { %240 = vst [vmem:[%s957_s26 + $0x150] sm:$0xff] %v239_v42 }
  0x3f   : > { %242 = vst [vmem:[%s957_s26 + $0x158] sm:$0xff] %v241_v43 }
  0x40   : > { %244 = vst [vmem:[%s957_s26 + $0x160] sm:$0xff] %v243_v44 }
  0x41   : > { %246 = vst [vmem:[%s957_s26 + $0x168] sm:$0xff] %v245_v45 }
  0x42   : > { %248 = vst [vmem:[%s957_s26 + $0x170] sm:$0xff] %v247_v46 }
  0x43   : > { %250 = vst [vmem:[%s957_s26 + $0x178] sm:$0xff] %v249_v47 }
  0x44   : > { %252 = vst [vmem:[%s957_s26 + $0x180] sm:$0xff] %v251_v48 }
  0x45   : > { %254 = vst [vmem:[%s957_s26 + $0x188] sm:$0xff] %v253_v49 }
  0x46   : > { %256 = vst [vmem:[%s957_s26 + $0x190] sm:$0xff] %v255_v50 }
  0x47   : > { %258 = vst [vmem:[%s957_s26 + $0x198] sm:$0xff] %v257_v51 }
  0x48   : > { %260 = vst [vmem:[%s957_s26 + $0x1a0] sm:$0xff] %v259_v52 }
  0x49   : > { %262 = vst [vmem:[%s957_s26 + $0x1a8] sm:$0xff] %v261_v53 }
  0x4a   : > { %264 = vst [vmem:[%s957_s26 + $0x1b0] sm:$0xff] %v263_v54 }
  0x4b   : > { %266 = vst [vmem:[%s957_s26 + $0x1b8] sm:$0xff] %v265_v55 }
  0x4c   : > { %268 = vst [vmem:[%s957_s26 + $0x1c0] sm:$0xff] %v267_v56 }
  0x4d   : > { %270 = vst [vmem:[%s957_s26 + $0x1c8] sm:$0xff] %v269_v57 }
  0x4e   : > { %272 = vst [vmem:[%s957_s26 + $0x1d0] sm:$0xff] %v271_v58 }
  0x4f   : > { %274 = vst [vmem:[%s957_s26 + $0x1d8] sm:$0xff] %v273_v59 }
  0x50   : > { %276 = vst [vmem:[%s957_s26 + $0x1e0] sm:$0xff] %v275_v60 }
  0x51   : > { %278 = vst [vmem:[%s957_s26 + $0x1e8] sm:$0xff] %v277_v61 }
  0x52   : > { %280 = vst [vmem:[%s957_s26 + $0x1f0] sm:$0xff] %v279_v62 }
  0x53   : > { %282 = vst [vmem:[%s957_s26 + $0x1f8] sm:$0xff] %v281_v63 }
  0x54 PF: > { %p795_p8 = scmp.ge.s32.totalorder %s886_s13, 1  ;;  %p287_p9 = scmp.lt.s32.totalorder %s886_s13, 3 }
  0x56   : > { %p288_p10 = pnand %p795_p8, %p287_p9 }
  0x57   : > { %s294_s7 = sand.u32 (!%p288_p10), 1, %s870_s9  }
  0x58   : > { %291 = sbr.rel (%p288_p10) target bundleno = 340 (0x154), region = 47  ;;  %s796_s8 = sshll.u32 (!%p288_p10), %s294_s7, 9 }
  0x59   : > { %s1099_s15 = scalar_lea.vmem (!%p288_p10), [#allocation2], %s796_s8  ;;  %s1109_s9 = scalar_lea.vmem (!%p288_p10), [#allocation3], %s796_s8 }
  0x5d   : > { %v395_v0 = vld [vmem:[%s1383_s1 + $0x10] sm:$0xff]  ;;  %v393_v1 = vld [vmem:[%s1383_s1] sm:$0xff]  ;;  %v888_v2 = vmov 0   ;;  %v396_v3 = vld [vmem:[%s1383_s1 + $0x18] sm:$0xff]  ;;  %s804_s16 = sshll.u32 (%p939_p6), %s878_s11, 7 }
  0x5e   : > { %847 = vset.pattern.permute.xlu1 %v888_v2  ;;  %846 = vset.pattern.permute.xlu0 %v888_v2  ;;  %v394_v4 = vld [vmem:[%s1383_s1 + $0x8] sm:$0xff]  ;;  %v361_v5 = vld [vmem:[%s1099_s15 + $0x100] sm:$0xff]  ;;  %v363_v7 = vld [vmem:[%s1099_s15 + $0x110] sm:$0xff]  ;;  %s1239_s21 = scalar_lea.vmem (%p939_p6), %s1384_s2, %s804_s16 }
  0x5f   : > { %409 = vperm.xlu1 %847, %v395_v0   ;;  %399 = vperm.xlu0 %846, %v393_v1   ;;  %v362_v6 = vld [vmem:[%s1099_s15 + $0x108] sm:$0xff]  ;;  %v364_v8 = vld [vmem:[%s1099_s15 + $0x118] sm:$0xff]  ;;  %v365_v10 = vld [vmem:[%s1099_s15 + $0x120] sm:$0xff] }
  0x60   : > { %v366_v11 = vld [vmem:[%s1099_s15 + $0x128] sm:$0xff]  ;;  %v367_v15 = vld [vmem:[%s1099_s15 + $0x130] sm:$0xff]  ;;  %v368_v17 = vld [vmem:[%s1099_s15 + $0x138] sm:$0xff] }
  0x61   : > { %v369_v19 = vld [vmem:[%s1099_s15 + $0x140] sm:$0xff]  ;;  %v370_v21 = vld [vmem:[%s1099_s15 + $0x148] sm:$0xff]  ;;  %v371_v23 = vld [vmem:[%s1099_s15 + $0x150] sm:$0xff] }
  0x62   : > { %v372_v25 = vld [vmem:[%s1099_s15 + $0x158] sm:$0xff]  ;;  %v373_v27 = vld [vmem:[%s1099_s15 + $0x160] sm:$0xff]  ;;  %v374_v29 = vld [vmem:[%s1099_s15 + $0x168] sm:$0xff] }
  0x63   : > { %v375_v31 = vld [vmem:[%s1099_s15 + $0x170] sm:$0xff]  ;;  %v376_v33 = vld [vmem:[%s1099_s15 + $0x178] sm:$0xff]  ;;  %v329_v37 = vld [vmem:[%s1099_s15] sm:$0xff] }
  0x64   : > { %v330_v39 = vld [vmem:[%s1099_s15 + $0x8] sm:$0xff]  ;;  %v331_v41 = vld [vmem:[%s1099_s15 + $0x10] sm:$0xff]  ;;  %v332_v42 = vld [vmem:[%s1099_s15 + $0x18] sm:$0xff] }
  0x65   : > { %v333_v44 = vld [vmem:[%s1099_s15 + $0x20] sm:$0xff]  ;;  %v334_v46 = vld [vmem:[%s1099_s15 + $0x28] sm:$0xff]  ;;  %v335_v48 = vld [vmem:[%s1099_s15 + $0x30] sm:$0xff] }
  0x66   : > { %v336_v50 = vld [vmem:[%s1099_s15 + $0x38] sm:$0xff]  ;;  %v337_v52 = vld [vmem:[%s1099_s15 + $0x40] sm:$0xff]  ;;  %v338_v54 = vld [vmem:[%s1099_s15 + $0x48] sm:$0xff] }
  0x67   : > { %414 = vperm.xlu1 %847, %v396_v3   ;;  %404 = vperm.xlu0 %846, %v394_v4   ;;  %v339_v56 = vld [vmem:[%s1099_s15 + $0x50] sm:$0xff]  ;;  %v340_v58 = vld [vmem:[%s1099_s15 + $0x58] sm:$0xff]  ;;  %v341_v60 = vld [vmem:[%s1099_s15 + $0x60] sm:$0xff] }
  0x68   : > { %v342_v62 = vld [vmem:[%s1099_s15 + $0x68] sm:$0xff]  ;;  %v343_v0 = vld [vmem:[%s1099_s15 + $0x70] sm:$0xff]  ;;  %v344_v2 = vld [vmem:[%s1099_s15 + $0x78] sm:$0xff] }
  0xd1   : > { %v410_v9 = vpop.permute.xlu1 %409  ;;  %v400_v36 = vpop.permute.xlu0 %399 }
  0xd2   : > { %v449_v12 = vmul.f32 %v410_v9, %v361_v5  ;;  %v450_v13 = vmul.f32 %v410_v9, %v362_v6  ;;  %v451_v14 = vmul.f32 %v410_v9, %v363_v7  ;;  %v452_v16 = vmul.f32 %v410_v9, %v364_v8  ;;  %v377_v6 = vld [vmem:[%s1099_s15 + $0x180] sm:$0xff]  ;;  %v378_v8 = vld [vmem:[%s1099_s15 + $0x188] sm:$0xff] }
  0xd3   : > { %v453_v18 = vmul.f32 %v410_v9, %v365_v10  ;;  %v454_v20 = vmul.f32 %v410_v9, %v366_v11  ;;  %v455_v22 = vmul.f32 %v410_v9, %v367_v15  ;;  %v456_v24 = vmul.f32 %v410_v9, %v368_v17  ;;  %v379_v10 = vld [vmem:[%s1099_s15 + $0x190] sm:$0xff]  ;;  %v380_v11 = vld [vmem:[%s1099_s15 + $0x198] sm:$0xff]  ;;  %v382_v15 = vld [vmem:[%s1099_s15 + $0x1a8] sm:$0xff] }
  0xd4   : > { %513 = vst [vmem:[%s1109_s9 + $0x100] sm:$0xff] %v449_v12  ;;  %v457_v26 = vmul.f32 %v410_v9, %v369_v19  ;;  %v458_v28 = vmul.f32 %v410_v9, %v370_v21  ;;  %v459_v30 = vmul.f32 %v410_v9, %v371_v23  ;;  %v460_v32 = vmul.f32 %v410_v9, %v372_v25  ;;  %v383_v17 = vld [vmem:[%s1099_s15 + $0x1b0] sm:$0xff]  ;;  %v384_v19 = vld [vmem:[%s1099_s15 + $0x1b8] sm:$0xff]  ;;  %v385_v21 = vld [vmem:[%s1099_s15 + $0x1c0] sm:$0xff] }
  0xd5   : > { %514 = vst [vmem:[%s1109_s9 + $0x108] sm:$0xff] %v450_v13  ;;  %v461_v34 = vmul.f32 %v410_v9, %v373_v27  ;;  %v462_v35 = vmul.f32 %v410_v9, %v374_v29  ;;  %v463_v38 = vmul.f32 %v410_v9, %v375_v31  ;;  %v464_v40 = vmul.f32 %v410_v9, %v376_v33  ;;  %v381_v13 = vld [vmem:[%s1099_s15 + $0x1a0] sm:$0xff]  ;;  %v386_v23 = vld [vmem:[%s1099_s15 + $0x1c8] sm:$0xff]  ;;  %v387_v25 = vld [vmem:[%s1099_s15 + $0x1d0] sm:$0xff] }
  0xd6   : > { %515 = vst [vmem:[%s1109_s9 + $0x110] sm:$0xff] %v451_v14  ;;  %v417_v43 = vmul.f32 %v400_v36, %v329_v37  ;;  %v418_v45 = vmul.f32 %v400_v36, %v330_v39  ;;  %v419_v47 = vmul.f32 %v400_v36, %v331_v41  ;;  %v420_v49 = vmul.f32 %v400_v36, %v332_v42  ;;  %v388_v27 = vld [vmem:[%s1099_s15 + $0x1d8] sm:$0xff]  ;;  %v389_v29 = vld [vmem:[%s1099_s15 + $0x1e0] sm:$0xff]  ;;  %v390_v31 = vld [vmem:[%s1099_s15 + $0x1e8] sm:$0xff] }
  0xd7   : > { %516 = vst [vmem:[%s1109_s9 + $0x118] sm:$0xff] %v452_v16  ;;  %v421_v51 = vmul.f32 %v400_v36, %v333_v44  ;;  %v422_v53 = vmul.f32 %v400_v36, %v334_v46  ;;  %v423_v55 = vmul.f32 %v400_v36, %v335_v48  ;;  %v424_v57 = vmul.f32 %v400_v36, %v336_v50  ;;  %v391_v33 = vld [vmem:[%s1099_s15 + $0x1f0] sm:$0xff]  ;;  %v345_v39 = vld [vmem:[%s1099_s15 + $0x80] sm:$0xff]  ;;  %v346_v41 = vld [vmem:[%s1099_s15 + $0x88] sm:$0xff] }
  0xd8   : > { %517 = vst [vmem:[%s1109_s9 + $0x120] sm:$0xff] %v453_v18  ;;  %v425_v59 = vmul.f32 %v400_v36, %v337_v52  ;;  %v426_v61 = vmul.f32 %v400_v36, %v338_v54  ;;  %v427_v63 = vmul.f32 %v400_v36, %v339_v56  ;;  %v428_v1 = vmul.f32 %v400_v36, %v340_v58  ;;  %v348_v44 = vld [vmem:[%s1099_s15 + $0x98] sm:$0xff]  ;;  %v349_v46 = vld [vmem:[%s1099_s15 + $0xa0] sm:$0xff]  ;;  %v350_v48 = vld [vmem:[%s1099_s15 + $0xa8] sm:$0xff] }
  0xd9   : > { %518 = vst [vmem:[%s1109_s9 + $0x128] sm:$0xff] %v454_v20  ;;  %v429_v3 = vmul.f32 %v400_v36, %v341_v60  ;;  %v430_v4 = vmul.f32 %v400_v36, %v342_v62  ;;  %v415_v5 = vpop.permute.xlu1 %414  ;;  %v431_v7 = vmul.f32 %v400_v36, %v343_v0  ;;  %v432_v9 = vmul.f32 %v400_v36, %v344_v2  ;;  %v351_v50 = vld [vmem:[%s1099_s15 + $0xb0] sm:$0xff]  ;;  %v352_v52 = vld [vmem:[%s1099_s15 + $0xb8] sm:$0xff]  ;;  %v353_v54 = vld [vmem:[%s1099_s15 + $0xc0] sm:$0xff] }
  0xda   : > { %519 = vst [vmem:[%s1109_s9 + $0x130] sm:$0xff] %v455_v22  ;;  %v465_v12 = vmul.f32 %v415_v5, %v377_v6  ;;  %v466_v14 = vmul.f32 %v415_v5, %v378_v8  ;;  %v467_v16 = vmul.f32 %v415_v5, %v379_v10  ;;  %v468_v18 = vmul.f32 %v415_v5, %v380_v11  ;;  %v354_v56 = vld [vmem:[%s1099_s15 + $0xc8] sm:$0xff]  ;;  %v355_v58 = vld [vmem:[%s1099_s15 + $0xd0] sm:$0xff]  ;;  %v356_v60 = vld [vmem:[%s1099_s15 + $0xd8] sm:$0xff] }
  0xdb   : > { %520 = vst [vmem:[%s1109_s9 + $0x138] sm:$0xff] %v456_v24  ;;  %v469_v20 = vmul.f32 %v415_v5, %v381_v13  ;;  %v470_v22 = vmul.f32 %v415_v5, %v382_v15  ;;  %v471_v24 = vmul.f32 %v415_v5, %v383_v17  ;;  %v477_v36 = vmul.f32 %v415_v5, %v389_v29  ;;  %v357_v62 = vld [vmem:[%s1099_s15 + $0xe0] sm:$0xff]  ;;  %v358_v0 = vld [vmem:[%s1099_s15 + $0xe8] sm:$0xff]  ;;  %v359_v2 = vld [vmem:[%s1099_s15 + $0xf0] sm:$0xff] }
  0xdc   : > { %521 = vst [vmem:[%s1109_s9 + $0x140] sm:$0xff] %v457_v26  ;;  %v472_v26 = vmul.f32 %v415_v5, %v384_v19  ;;  %v478_v37 = vmul.f32 %v415_v5, %v390_v31 }
  0xdd   : > { %522 = vst [vmem:[%s1109_s9 + $0x148] sm:$0xff] %v458_v28  ;;  %v473_v28 = vmul.f32 %v415_v5, %v385_v21 }
  0xde   : > { %523 = vst [vmem:[%s1109_s9 + $0x150] sm:$0xff] %v459_v30  ;;  %v474_v30 = vmul.f32 %v415_v5, %v386_v23 }
  0xdf   : > { %524 = vst [vmem:[%s1109_s9 + $0x158] sm:$0xff] %v460_v32  ;;  %v475_v32 = vmul.f32 %v415_v5, %v387_v25 }
  0xe0   : > { %525 = vst [vmem:[%s1109_s9 + $0x160] sm:$0xff] %v461_v34  ;;  %v476_v34 = vmul.f32 %v415_v5, %v388_v27 }
  0xe1   : > { %526 = vst [vmem:[%s1109_s9 + $0x168] sm:$0xff] %v462_v35  ;;  %v392_v35 = vld [vmem:[%s1099_s15 + $0x1f8] sm:$0xff] }
  0xe2   : > { %527 = vst [vmem:[%s1109_s9 + $0x170] sm:$0xff] %v463_v38  ;;  %v405_v38 = vpop.permute.xlu0 %404  ;;  %v480_v42 = vmul.f32 %v415_v5, %v392_v35 }
  0xe3   : > { %528 = vst [vmem:[%s1109_s9 + $0x178] sm:$0xff] %v464_v40  ;;  %v479_v40 = vmul.f32 %v415_v5, %v391_v33  ;;  %v445_v5 = vmul.f32 %v405_v38, %v357_v62  ;;  %v446_v6 = vmul.f32 %v405_v38, %v358_v0 }
  0xe4   : > { %481 = vst [vmem:[%s1109_s9] sm:$0xff] %v417_v43  ;;  %v347_v43 = vld [vmem:[%s1099_s15 + $0x90] sm:$0xff] }
  0xe5   : > { %482 = vst [vmem:[%s1109_s9 + $0x8] sm:$0xff] %v418_v45  ;;  %v433_v45 = vmul.f32 %v405_v38, %v345_v39 }
  0xe6   : > { %483 = vst [vmem:[%s1109_s9 + $0x10] sm:$0xff] %v419_v47  ;;  %v434_v47 = vmul.f32 %v405_v38, %v346_v41  ;;  %v634_v41 = vld [vmem:[%s1109_s9 + $0x100] sm:$0xff] (%p939_p6) }
  0xe7   : > { %484 = vst [vmem:[%s1109_s9 + $0x18] sm:$0xff] %v420_v49  ;;  %v435_v49 = vmul.f32 %v405_v38, %v347_v43  ;;  %v638_v43 = vld [vmem:[%s1109_s9 + $0x110] sm:$0xff] (%p939_p6) }
  0xe8   : > { %485 = vst [vmem:[%s1109_s9 + $0x20] sm:$0xff] %v421_v51  ;;  %v436_v51 = vmul.f32 %v405_v38, %v348_v44  ;;  %v640_v44 = vld [vmem:[%s1109_s9 + $0x118] sm:$0xff] (%p939_p6) }
  0xe9   : > { %486 = vst [vmem:[%s1109_s9 + $0x28] sm:$0xff] %v422_v53  ;;  %v437_v53 = vmul.f32 %v405_v38, %v349_v46  ;;  %v644_v46 = vld [vmem:[%s1109_s9 + $0x128] sm:$0xff] (%p939_p6) }
  0xea   : > { %487 = vst [vmem:[%s1109_s9 + $0x30] sm:$0xff] %v423_v55  ;;  %v438_v55 = vmul.f32 %v405_v38, %v350_v48  ;;  %v648_v48 = vld [vmem:[%s1109_s9 + $0x138] sm:$0xff] (%p939_p6) }
  0xeb   : > { %488 = vst [vmem:[%s1109_s9 + $0x38] sm:$0xff] %v424_v57  ;;  %v439_v57 = vmul.f32 %v405_v38, %v351_v50  ;;  %v652_v50 = vld [vmem:[%s1109_s9 + $0x148] sm:$0xff] (%p939_p6) }
  0xec   : > { %489 = vst [vmem:[%s1109_s9 + $0x40] sm:$0xff] %v425_v59  ;;  %v440_v59 = vmul.f32 %v405_v38, %v352_v52  ;;  %v572_v10 = vld [vmem:[%s1109_s9 + $0x8] sm:$0xff] (%p939_p6)  ;;  %v656_v52 = vld [vmem:[%s1109_s9 + $0x158] sm:$0xff] (%p939_p6) }
  0xed   : > { %490 = vst [vmem:[%s1109_s9 + $0x48] sm:$0xff] %v426_v61  ;;  %v441_v61 = vmul.f32 %v405_v38, %v353_v54  ;;  %v574_v11 = vld [vmem:[%s1109_s9 + $0x10] sm:$0xff] (%p939_p6)  ;;  %v660_v54 = vld [vmem:[%s1109_s9 + $0x168] sm:$0xff] (%p939_p6) }
  0xee   : > { %491 = vst [vmem:[%s1109_s9 + $0x50] sm:$0xff] %v427_v63  ;;  %v442_v63 = vmul.f32 %v405_v38, %v354_v56  ;;  %v664_v56 = vld [vmem:[%s1109_s9 + $0x178] sm:$0xff] (%p939_p6) }
  0xef   : > { %492 = vst [vmem:[%s1109_s9 + $0x58] sm:$0xff] %v428_v1  ;;  %v443_v1 = vmul.f32 %v405_v38, %v355_v58  ;;  %v578_v13 = vld [vmem:[%s1109_s9 + $0x20] sm:$0xff] (%p939_p6) }
  0xf0   : > { %493 = vst [vmem:[%s1109_s9 + $0x60] sm:$0xff] %v429_v3  ;;  %v444_v3 = vmul.f32 %v405_v38, %v356_v60 }
  0xf1   : > { %494 = vst [vmem:[%s1109_s9 + $0x68] sm:$0xff] %v430_v4  ;;  %v360_v4 = vld [vmem:[%s1099_s15 + $0xf8] sm:$0xff]  ;;  %v582_v15 = vld [vmem:[%s1109_s9 + $0x30] sm:$0xff] (%p939_p6) }
  0xf2   : > { %495 = vst [vmem:[%s1109_s9 + $0x70] sm:$0xff] %v431_v7  ;;  %v447_v7 = vmul.f32 %v405_v38, %v359_v2  ;;  %v448_v8 = vmul.f32 %v405_v38, %v360_v4 }
  0xf3   : > { %496 = vst [vmem:[%s1109_s9 + $0x78] sm:$0xff] %v432_v9  ;;  %v570_v9 = vld [vmem:[%s1109_s9] sm:$0xff] (%p939_p6) }
  0xf4   : > { %529 = vst [vmem:[%s1109_s9 + $0x180] sm:$0xff] %v465_v12  ;;  %v576_v12 = vld [vmem:[%s1109_s9 + $0x18] sm:$0xff] (%p939_p6)  ;;  %v586_v17 = vld [vmem:[%s1109_s9 + $0x40] sm:$0xff] (%p939_p6) }
  0xf5   : > { %530 = vst [vmem:[%s1109_s9 + $0x188] sm:$0xff] %v466_v14  ;;  %v580_v14 = vld [vmem:[%s1109_s9 + $0x28] sm:$0xff] (%p939_p6)  ;;  %v590_v19 = vld [vmem:[%s1109_s9 + $0x50] sm:$0xff] (%p939_p6) }
  0xf6   : > { %531 = vst [vmem:[%s1109_s9 + $0x190] sm:$0xff] %v467_v16  ;;  %v584_v16 = vld [vmem:[%s1109_s9 + $0x38] sm:$0xff] (%p939_p6) }
  0xf7   : > { %532 = vst [vmem:[%s1109_s9 + $0x198] sm:$0xff] %v468_v18  ;;  %v588_v18 = vld [vmem:[%s1109_s9 + $0x48] sm:$0xff] (%p939_p6)  ;;  %v594_v21 = vld [vmem:[%s1109_s9 + $0x60] sm:$0xff] (%p939_p6) }
  0xf8   : > { %533 = vst [vmem:[%s1109_s9 + $0x1a0] sm:$0xff] %v469_v20  ;;  %v592_v20 = vld [vmem:[%s1109_s9 + $0x58] sm:$0xff] (%p939_p6) }
  0xf9   : > { %534 = vst [vmem:[%s1109_s9 + $0x1a8] sm:$0xff] %v470_v22  ;;  %v596_v22 = vld [vmem:[%s1109_s9 + $0x68] sm:$0xff] (%p939_p6)  ;;  %v598_v23 = vld [vmem:[%s1109_s9 + $0x70] sm:$0xff] (%p939_p6) }
  0xfa   : > { %535 = vst [vmem:[%s1109_s9 + $0x1b0] sm:$0xff] %v471_v24  ;;  %v600_v24 = vld [vmem:[%s1109_s9 + $0x78] sm:$0xff] (%p939_p6) }
  0xfb   : > { %536 = vst [vmem:[%s1109_s9 + $0x1b8] sm:$0xff] %v472_v26 }
  0xfc   : > { %537 = vst [vmem:[%s1109_s9 + $0x1c0] sm:$0xff] %v473_v28  ;;  %v668_v58 = vld [vmem:[%s1109_s9 + $0x188] sm:$0xff] (%p939_p6) }
  0xfd   : > { %538 = vst [vmem:[%s1109_s9 + $0x1c8] sm:$0xff] %v474_v30 }
  0xfe   : > { %539 = vst [vmem:[%s1109_s9 + $0x1d0] sm:$0xff] %v475_v32  ;;  %v672_v60 = vld [vmem:[%s1109_s9 + $0x198] sm:$0xff] (%p939_p6) }
  0xff   : > { %540 = vst [vmem:[%s1109_s9 + $0x1d8] sm:$0xff] %v476_v34 }
 0x100   : > { %541 = vst [vmem:[%s1109_s9 + $0x1e0] sm:$0xff] %v477_v36  ;;  %v676_v62 = vld [vmem:[%s1109_s9 + $0x1a8] sm:$0xff] (%p939_p6) }
 0x101   : > { %542 = vst [vmem:[%s1109_s9 + $0x1e8] sm:$0xff] %v478_v37 }
 0x102   : > { %543 = vst [vmem:[%s1109_s9 + $0x1f0] sm:$0xff] %v479_v40  ;;  %v680_v0 = vld [vmem:[%s1109_s9 + $0x1b8] sm:$0xff] (%p939_p6) }
 0x103   : > { %544 = vst [vmem:[%s1109_s9 + $0x1f8] sm:$0xff] %v480_v42  ;;  %v636_v42 = vld [vmem:[%s1109_s9 + $0x108] sm:$0xff] (%p939_p6) }
 0x104   : > { %497 = vst [vmem:[%s1109_s9 + $0x80] sm:$0xff] %v433_v45  ;;  %v642_v45 = vld [vmem:[%s1109_s9 + $0x120] sm:$0xff] (%p939_p6)  ;;  %v684_v2 = vld [vmem:[%s1109_s9 + $0x1c8] sm:$0xff] (%p939_p6) }
 0x105   : > { %498 = vst [vmem:[%s1109_s9 + $0x88] sm:$0xff] %v434_v47  ;;  %v646_v47 = vld [vmem:[%s1109_s9 + $0x130] sm:$0xff] (%p939_p6) }
 0x106   : > { %499 = vst [vmem:[%s1109_s9 + $0x90] sm:$0xff] %v435_v49  ;;  %v650_v49 = vld [vmem:[%s1109_s9 + $0x140] sm:$0xff] (%p939_p6)  ;;  %v688_v4 = vld [vmem:[%s1109_s9 + $0x1d8] sm:$0xff] (%p939_p6) }
 0x107   : > { %500 = vst [vmem:[%s1109_s9 + $0x98] sm:$0xff] %v436_v51  ;;  %v654_v51 = vld [vmem:[%s1109_s9 + $0x150] sm:$0xff] (%p939_p6) }
 0x108   : > { %501 = vst [vmem:[%s1109_s9 + $0xa0] sm:$0xff] %v437_v53  ;;  %v658_v53 = vld [vmem:[%s1109_s9 + $0x160] sm:$0xff] (%p939_p6) }
 0x109   : > { %502 = vst [vmem:[%s1109_s9 + $0xa8] sm:$0xff] %v438_v55  ;;  %v662_v55 = vld [vmem:[%s1109_s9 + $0x170] sm:$0xff] (%p939_p6) }
 0x10a   : > { %503 = vst [vmem:[%s1109_s9 + $0xb0] sm:$0xff] %v439_v57  ;;  %v666_v57 = vld [vmem:[%s1109_s9 + $0x180] sm:$0xff] (%p939_p6) }
 0x10b   : > { %504 = vst [vmem:[%s1109_s9 + $0xb8] sm:$0xff] %v440_v59  ;;  %v602_v25 = vld [vmem:[%s1109_s9 + $0x80] sm:$0xff] (%p939_p6)  ;;  %v670_v59 = vld [vmem:[%s1109_s9 + $0x190] sm:$0xff] (%p939_p6) }
 0x10c   : > { %505 = vst [vmem:[%s1109_s9 + $0xc0] sm:$0xff] %v441_v61  ;;  %v604_v26 = vld [vmem:[%s1109_s9 + $0x88] sm:$0xff] (%p939_p6)  ;;  %v674_v61 = vld [vmem:[%s1109_s9 + $0x1a0] sm:$0xff] (%p939_p6) }
 0x10d   : > { %506 = vst [vmem:[%s1109_s9 + $0xc8] sm:$0xff] %v442_v63  ;;  %v606_v27 = vld [vmem:[%s1109_s9 + $0x90] sm:$0xff] (%p939_p6) }
 0x10e   : > { %507 = vst [vmem:[%s1109_s9 + $0xd0] sm:$0xff] %v443_v1  ;;  %v608_v28 = vld [vmem:[%s1109_s9 + $0x98] sm:$0xff] (%p939_p6)  ;;  %v678_v63 = vld [vmem:[%s1109_s9 + $0x1b0] sm:$0xff] (%p939_p6)  ;;  %v682_v1 = vld [vmem:[%s1109_s9 + $0x1c0] sm:$0xff] (%p939_p6) }
 0x10f   : > { %508 = vst [vmem:[%s1109_s9 + $0xd8] sm:$0xff] %v444_v3  ;;  %551 = sbr.rel (!%p939_p6) target bundleno = 340 (0x154), region = 55  ;;  %v610_v29 = vld [vmem:[%s1109_s9 + $0xa0] sm:$0xff] (%p939_p6)  ;;  %v686_v3 = vld [vmem:[%s1109_s9 + $0x1d0] sm:$0xff] (%p939_p6) }
 0x110   : > { %509 = vst [vmem:[%s1109_s9 + $0xe0] sm:$0xff] %v445_v5  ;;  %v612_v30 = vld [vmem:[%s1109_s9 + $0xa8] sm:$0xff] (%p939_p6)  ;;  %v690_v5 = vld [vmem:[%s1109_s9 + $0x1e0] sm:$0xff] (%p939_p6) }
 0x111   : > { %510 = vst [vmem:[%s1109_s9 + $0xe8] sm:$0xff] %v446_v6  ;;  %v614_v31 = vld [vmem:[%s1109_s9 + $0xb0] sm:$0xff] (%p939_p6)  ;;  %v692_v6 = vld [vmem:[%s1109_s9 + $0x1e8] sm:$0xff] (%p939_p6) }
 0x112   : > { %511 = vst [vmem:[%s1109_s9 + $0xf0] sm:$0xff] %v447_v7  ;;  %v616_v32 = vld [vmem:[%s1109_s9 + $0xb8] sm:$0xff] (%p939_p6)  ;;  %v694_v7 = vld [vmem:[%s1109_s9 + $0x1f0] sm:$0xff] (%p939_p6) }
 0x113   : > { %512 = vst [vmem:[%s1109_s9 + $0xf8] sm:$0xff] %v448_v8  ;;  %v618_v33 = vld [vmem:[%s1109_s9 + $0xc0] sm:$0xff] (%p939_p6)  ;;  %v696_v8 = vld [vmem:[%s1109_s9 + $0x1f8] sm:$0xff] (%p939_p6) }
 0x114   : > { %571 = vst [vmem:[%s1239_s21] sm:$0xff] %v570_v9  ;;  %v620_v34 = vld [vmem:[%s1109_s9 + $0xc8] sm:$0xff] }
 0x115   : > { %573 = vst [vmem:[%s1239_s21 + $0x8] sm:$0xff] %v572_v10  ;;  %v622_v35 = vld [vmem:[%s1109_s9 + $0xd0] sm:$0xff] }
 0x116   : > { %575 = vst [vmem:[%s1239_s21 + $0x10] sm:$0xff] %v574_v11  ;;  %v624_v36 = vld [vmem:[%s1109_s9 + $0xd8] sm:$0xff] }
 0x117   : > { %577 = vst [vmem:[%s1239_s21 + $0x18] sm:$0xff] %v576_v12  ;;  %v626_v37 = vld [vmem:[%s1109_s9 + $0xe0] sm:$0xff] }
 0x118   : > { %579 = vst [vmem:[%s1239_s21 + $0x20] sm:$0xff] %v578_v13  ;;  %v628_v38 = vld [vmem:[%s1109_s9 + $0xe8] sm:$0xff] }
 0x119   : > { %581 = vst [vmem:[%s1239_s21 + $0x28] sm:$0xff] %v580_v14  ;;  %v630_v39 = vld [vmem:[%s1109_s9 + $0xf0] sm:$0xff] }
 0x11a   : > { %583 = vst [vmem:[%s1239_s21 + $0x30] sm:$0xff] %v582_v15  ;;  %v632_v40 = vld [vmem:[%s1109_s9 + $0xf8] sm:$0xff] }
 0x11b   : > { %585 = vst [vmem:[%s1239_s21 + $0x38] sm:$0xff] %v584_v16 }
 0x11c   : > { %587 = vst [vmem:[%s1239_s21 + $0x40] sm:$0xff] %v586_v17 }
 0x11d   : > { %589 = vst [vmem:[%s1239_s21 + $0x48] sm:$0xff] %v588_v18 }
 0x11e   : > { %591 = vst [vmem:[%s1239_s21 + $0x50] sm:$0xff] %v590_v19 }
 0x11f   : > { %593 = vst [vmem:[%s1239_s21 + $0x58] sm:$0xff] %v592_v20 }
 0x120   : > { %595 = vst [vmem:[%s1239_s21 + $0x60] sm:$0xff] %v594_v21 }
 0x121   : > { %597 = vst [vmem:[%s1239_s21 + $0x68] sm:$0xff] %v596_v22 }
 0x122   : > { %599 = vst [vmem:[%s1239_s21 + $0x70] sm:$0xff] %v598_v23 }
 0x123   : > { %601 = vst [vmem:[%s1239_s21 + $0x78] sm:$0xff] %v600_v24 }
 0x124   : > { %603 = vst [vmem:[%s1239_s21 + $0x100] sm:$0xff] %v602_v25 }
 0x125   : > { %605 = vst [vmem:[%s1239_s21 + $0x108] sm:$0xff] %v604_v26 }
 0x126   : > { %607 = vst [vmem:[%s1239_s21 + $0x110] sm:$0xff] %v606_v27 }
 0x127   : > { %609 = vst [vmem:[%s1239_s21 + $0x118] sm:$0xff] %v608_v28 }
 0x128   : > { %611 = vst [vmem:[%s1239_s21 + $0x120] sm:$0xff] %v610_v29 }
 0x129   : > { %613 = vst [vmem:[%s1239_s21 + $0x128] sm:$0xff] %v612_v30 }
 0x12a   : > { %615 = vst [vmem:[%s1239_s21 + $0x130] sm:$0xff] %v614_v31 }
 0x12b   : > { %617 = vst [vmem:[%s1239_s21 + $0x138] sm:$0xff] %v616_v32 }
 0x12c   : > { %619 = vst [vmem:[%s1239_s21 + $0x140] sm:$0xff] %v618_v33 }
 0x12d   : > { %621 = vst [vmem:[%s1239_s21 + $0x148] sm:$0xff] %v620_v34 }
 0x12e   : > { %623 = vst [vmem:[%s1239_s21 + $0x150] sm:$0xff] %v622_v35 }
 0x12f   : > { %625 = vst [vmem:[%s1239_s21 + $0x158] sm:$0xff] %v624_v36 }
 0x130   : > { %627 = vst [vmem:[%s1239_s21 + $0x160] sm:$0xff] %v626_v37 }
 0x131   : > { %629 = vst [vmem:[%s1239_s21 + $0x168] sm:$0xff] %v628_v38 }
 0x132   : > { %631 = vst [vmem:[%s1239_s21 + $0x170] sm:$0xff] %v630_v39 }
 0x133   : > { %633 = vst [vmem:[%s1239_s21 + $0x178] sm:$0xff] %v632_v40 }
 0x134   : > { %635 = vst [vmem:[%s1239_s21 + $0x200] sm:$0xff] %v634_v41 }
 0x135   : > { %637 = vst [vmem:[%s1239_s21 + $0x208] sm:$0xff] %v636_v42 }
 0x136   : > { %639 = vst [vmem:[%s1239_s21 + $0x210] sm:$0xff] %v638_v43 }
 0x137   : > { %641 = vst [vmem:[%s1239_s21 + $0x218] sm:$0xff] %v640_v44 }
 0x138   : > { %643 = vst [vmem:[%s1239_s21 + $0x220] sm:$0xff] %v642_v45 }
 0x139   : > { %645 = vst [vmem:[%s1239_s21 + $0x228] sm:$0xff] %v644_v46 }
 0x13a   : > { %647 = vst [vmem:[%s1239_s21 + $0x230] sm:$0xff] %v646_v47 }
 0x13b   : > { %649 = vst [vmem:[%s1239_s21 + $0x238] sm:$0xff] %v648_v48 }
 0x13c   : > { %651 = vst [vmem:[%s1239_s21 + $0x240] sm:$0xff] %v650_v49 }
 0x13d   : > { %653 = vst [vmem:[%s1239_s21 + $0x248] sm:$0xff] %v652_v50 }
 0x13e   : > { %655 = vst [vmem:[%s1239_s21 + $0x250] sm:$0xff] %v654_v51 }
 0x13f   : > { %657 = vst [vmem:[%s1239_s21 + $0x258] sm:$0xff] %v656_v52 }
 0x140   : > { %659 = vst [vmem:[%s1239_s21 + $0x260] sm:$0xff] %v658_v53 }
 0x141   : > { %661 = vst [vmem:[%s1239_s21 + $0x268] sm:$0xff] %v660_v54 }
 0x142   : > { %663 = vst [vmem:[%s1239_s21 + $0x270] sm:$0xff] %v662_v55 }
 0x143   : > { %665 = vst [vmem:[%s1239_s21 + $0x278] sm:$0xff] %v664_v56 }
 0x144   : > { %667 = vst [vmem:[%s1239_s21 + $0x300] sm:$0xff] %v666_v57 }
 0x145   : > { %669 = vst [vmem:[%s1239_s21 + $0x308] sm:$0xff] %v668_v58 }
 0x146   : > { %671 = vst [vmem:[%s1239_s21 + $0x310] sm:$0xff] %v670_v59 }
 0x147   : > { %673 = vst [vmem:[%s1239_s21 + $0x318] sm:$0xff] %v672_v60 }
 0x148   : > { %675 = vst [vmem:[%s1239_s21 + $0x320] sm:$0xff] %v674_v61 }
 0x149   : > { %677 = vst [vmem:[%s1239_s21 + $0x328] sm:$0xff] %v676_v62 }
 0x14a   : > { %679 = vst [vmem:[%s1239_s21 + $0x330] sm:$0xff] %v678_v63 }
 0x14b   : > { %681 = vst [vmem:[%s1239_s21 + $0x338] sm:$0xff] %v680_v0 }
 0x14c   : > { %683 = vst [vmem:[%s1239_s21 + $0x340] sm:$0xff] %v682_v1 }
 0x14d   : > { %685 = vst [vmem:[%s1239_s21 + $0x348] sm:$0xff] %v684_v2 }
 0x14e   : > { %687 = vst [vmem:[%s1239_s21 + $0x350] sm:$0xff] %v686_v3 }
 0x14f   : > { %689 = vst [vmem:[%s1239_s21 + $0x358] sm:$0xff] %v688_v4 }
 0x150   : > { %691 = vst [vmem:[%s1239_s21 + $0x360] sm:$0xff] %v690_v5 }
 0x151   : > { %693 = vst [vmem:[%s1239_s21 + $0x368] sm:$0xff] %v692_v6 }
 0x152   : > { %695 = vst [vmem:[%s1239_s21 + $0x370] sm:$0xff] %v694_v7 }
 0x153   : > { %697 = vst [vmem:[%s1239_s21 + $0x378] sm:$0xff] %v696_v8 }
 0x154 PF: > { %s12_s13 = sadd.s32 1, %s886_s13   ;;  %s1386_s9 = smov %s874_s10 }
 0x155   : > { %p9_p11 = scmp.ge.s32.totalorder %s12_s13, 4   ;;  %s1387_s10 = smov %s944_s19 }
 0x156   : > { %s1388_s11 = smov %s882_s12  ;;  %s1389_s12 = smov %s1391_s14 }
 0x157   :  { %11 = sbr.rel (!%p9_p11) target bundleno = 3 (0x3), region = 112 }

// kernel: se_block_forward.2
= control target key start
LH: loop header
LB: loop body
LE: loop exit
PB: predicated region body
PF: predicated region fallthrough
CT: control target
= control target key end

     0   :  { %vm367_vm4 = vcmask 130048   ;;  %vm403_vm8 = vcmask 123904   ;;  %s710_s1 = inlined_call_operand.vmem [shape: bf16[512,16], index: 1, kind: input, shape index: {}]   ;;  %s711_s0 = inlined_call_operand.vmem [shape: f32[2,512], index: 0, kind: input, shape index: {}]   ;;  %s712_s2 = inlined_call_operand.vmem [shape: bf16[16,16], index: 2, kind: input, shape index: {}]   ;;  %s713_s3 = inlined_call_operand.vmem [shape: f32[2,16], index: 3, kind: output, shape index: {}]  }
   0x1   :  { %v551_v0 = vld [vmem:[%s710_s1 + $0x38] sm:$0xff]  ;;  %v550_v4 = vld [vmem:[%s710_s1 + $0x30] sm:$0xff]  ;;  %v549_v8 = vld [vmem:[%s710_s1 + $0x28] sm:$0xff] }
   0x2   :  { %v559_v1 = vld [vmem:[%s710_s1 + $0x78] sm:$0xff]  ;;  %286 = vmatpush.bf16.msra.mxu0 %v551_v0  ;;  %v558_v5 = vld [vmem:[%s710_s1 + $0x70] sm:$0xff]  ;;  %v557_v9 = vld [vmem:[%s710_s1 + $0x68] sm:$0xff] }
   0x3   :  { %v567_v2 = vld [vmem:[%s710_s1 + $0xb8] sm:$0xff]  ;;  %299 = vmatpush.bf16.msra.mxu1 %v559_v1  ;;  %v566_v6 = vld [vmem:[%s710_s1 + $0xb0] sm:$0xff]  ;;  %v565_v10 = vld [vmem:[%s710_s1 + $0xa8] sm:$0xff] }
   0x4   :  { %v575_v3 = vld [vmem:[%s710_s1 + $0xf8] sm:$0xff]  ;;  %312 = vmatpush.bf16.msra.mxu2 %v567_v2  ;;  %v574_v7 = vld [vmem:[%s710_s1 + $0xf0] sm:$0xff]  ;;  %v573_v11 = vld [vmem:[%s710_s1 + $0xe8] sm:$0xff] }
   0x5   :  { %325 = vmatpush.bf16.msra.mxu3 %v575_v3  ;;  %v548_v12 = vld [vmem:[%s710_s1 + $0x20] sm:$0xff]  ;;  %v547_v17 = vld [vmem:[%s710_s1 + $0x18] sm:$0xff]  ;;  %v546_v21 = vld [vmem:[%s710_s1 + $0x10] sm:$0xff] }
   0x6   :  { %287 = vmatpush.bf16.msra.mxu0 %v550_v4  ;;  %v556_v13 = vld [vmem:[%s710_s1 + $0x60] sm:$0xff]  ;;  %v555_v18 = vld [vmem:[%s710_s1 + $0x58] sm:$0xff]  ;;  %v554_v22 = vld [vmem:[%s710_s1 + $0x50] sm:$0xff] }
   0x7   :  { %300 = vmatpush.bf16.msra.mxu1 %v558_v5  ;;  %v15_v14 = vld [vmem:[%s711_s0] sm:$0xff]  ;;  %v563_v19 = vld [vmem:[%s710_s1 + $0x98] sm:$0xff]  ;;  %v562_v23 = vld [vmem:[%s710_s1 + $0x90] sm:$0xff] }
   0x8   :  { %313 = vmatpush.bf16.msra.mxu2 %v566_v6  ;;  %v564_v15 = vld [vmem:[%s710_s1 + $0xa0] sm:$0xff]  ;;  %17 = vst [vmem:[#allocation1] ss:$4 sm:$0xff] %v15_v14  ;;  %v571_v20 = vld [vmem:[%s710_s1 + $0xd8] sm:$0xff]  ;;  %v570_v24 = vld [vmem:[%s710_s1 + $0xd0] sm:$0xff] }
   0x9   :  { %326 = vmatpush.bf16.msra.mxu3 %v574_v7  ;;  %v572_v16 = vld [vmem:[%s710_s1 + $0xe0] sm:$0xff]  ;;  %v545_v25 = vld [vmem:[%s710_s1 + $0x8] sm:$0xff] }
   0xa   :  { %288 = vmatpush.bf16.msra.mxu0 %v549_v8  ;;  %v553_v26 = vld [vmem:[%s710_s1 + $0x48] sm:$0xff]  ;;  %v544_v29 = vld [vmem:[%s710_s1] sm:$0xff] }
   0xb   :  { %301 = vmatpush.bf16.msra.mxu1 %v557_v9  ;;  %v561_v27 = vld [vmem:[%s710_s1 + $0x88] sm:$0xff]  ;;  %v552_v30 = vld [vmem:[%s710_s1 + $0x40] sm:$0xff] }
   0xc   :  { %314 = vmatpush.bf16.msra.mxu2 %v565_v10  ;;  %v569_v28 = vld [vmem:[%s710_s1 + $0xc8] sm:$0xff]  ;;  %v560_v31 = vld [vmem:[%s710_s1 + $0x80] sm:$0xff] }
   0xd   :  { %327 = vmatpush.bf16.msra.mxu3 %v573_v11  ;;  %v568_v32 = vld [vmem:[%s710_s1 + $0xc0] sm:$0xff] }
   0xe   :  { %289 = vmatpush.bf16.msra.mxu0 %v548_v12  ;;  %v576_v46 = vld [vmem:[%s712_s2] sm:$0xff] }
   0xf   :  { %302 = vmatpush.bf16.msra.mxu1 %v556_v13  ;;  %v18_v33 = vld.sshfl [vmem:[#allocation1] sm:$0xff pattern:$0x73625140]  ;;  %v19_v34 = vld.sshfl [vmem:[#allocation1 + $0x8] sm:$0xff pattern:$0x73625140] }
  0x10   :  { %315 = vmatpush.bf16.msra.mxu2 %v564_v15  ;;  %v20_v35 = vld.sshfl [vmem:[#allocation1 + $0x10] sm:$0xff pattern:$0x73625140]  ;;  %v21_v36 = vld.sshfl [vmem:[#allocation1 + $0x18] sm:$0xff pattern:$0x73625140]  ;;  %v26_v37 = vpack.c.bf16 %v18_v33, %v18_v33  ;;  %v27_v38 = vpack.c.bf16 %v19_v34, %v19_v34 }
  0x11   :  { %328 = vmatpush.bf16.msra.mxu3 %v572_v16  ;;  %v28_v39 = vpack.c.bf16 %v20_v35, %v20_v35  ;;  %v29_v40 = vpack.c.bf16 %v21_v36, %v21_v36 }
  0x12   :  { %290 = vmatpush.bf16.msra.mxu0 %v547_v17 }
  0x13   :  { %303 = vmatpush.bf16.msra.mxu1 %v555_v18 }
  0x14   :  { %316 = vmatpush.bf16.msra.mxu2 %v563_v19 }
  0x15   :  { %329 = vmatpush.bf16.msra.mxu3 %v571_v20 }
  0x16   :  { %291 = vmatpush.bf16.msra.mxu0 %v546_v21 }
  0x17   :  { %304 = vmatpush.bf16.msra.mxu1 %v554_v22 }
  0x18   :  { %317 = vmatpush.bf16.msra.mxu2 %v562_v23 }
  0x19   :  { %330 = vmatpush.bf16.msra.mxu3 %v570_v24 }
  0x1a   :  { %292 = vmatpush.bf16.msra.mxu0 %v545_v25 }
  0x1b   :  { %305 = vmatpush.bf16.msra.mxu1 %v553_v26 }
  0x1c   :  { %318 = vmatpush.bf16.msra.mxu2 %v561_v27 }
  0x1d   :  { %331 = vmatpush.bf16.msra.mxu3 %v569_v28 }
  0x1e   :  { %293 = vmatpush.bf16.msra.mxu0 %v544_v29 }
  0x1f   :  { %306 = vmatpush.bf16.msra.mxu1 %v552_v30 }
  0x20   :  { %319 = vmatpush.bf16.msra.mxu2 %v560_v31 }
  0x21   :  { %332 = vmatpush.bf16.msra.mxu3 %v568_v32  ;;  %294 = vmatmul.bf16.vlgmr.msra.gmra.mxu0 %v26_v37 }
  0x22   :  { %307 = vmatmul.bf16.vlgmr.msra.gmra.mxu1 %v27_v38  ;;  %378 = vmatpush.bf16.msrb.mxu0 %v576_v46 }
  0x23   :  { %320 = vmatmul.bf16.vlgmr.msra.gmra.mxu2 %v28_v39 }
  0x24   :  { %333 = vmatmul.bf16.vlgmr.msra.gmra.mxu3 %v29_v40 }
  0x9e   :  { %v295_v41 = vpop.f32.mrf.mxu0 }
  0x9f   :  { %v308_v42 = vpop.f32.mrf.mxu1 }
  0xa0   :  { %v309_v43 = vadd.f32 %v308_v42, %v295_v41 }
  0xa6   :  { %v321_v44 = vpop.f32.mrf.mxu2  ;;  %v297_v48 = vpop.f32.mrf.mxu0 }
  0xa7   :  { %v334_v45 = vpop.f32.mrf.mxu3  ;;  %v322_v47 = vadd.f32 %v321_v44, %v309_v43  ;;  %v310_v49 = vpop.f32.mrf.mxu1 }
  0xa9   :  { %v335_v50 = vadd.f32 %v334_v45, %v322_v47 }
  0xab   :  { %v537_v51 = vmul.f32 -1.442695, %v335_v50 }
  0xad   :  { %577 = vpow2.f32 %v537_v51 }
  0xae   :  { %v323_v52 = vpop.f32.mrf.mxu2 }
  0xaf   :  { %v336_v53 = vpop.f32.mrf.mxu3 }
  0xb3   :  { %v578_v54 = vpop.eup %577 }
  0xb4   :  { %v341_v55 = vadd.f32 1.0, %v578_v54 }
  0xb6   :  { %579 = vrcp.f32 %v341_v55  ;;  %v353_v59 = vand.u32 2147483648, %v341_v55  ;;  %v351_v61 = vand.u32 2147483647, %v341_v55  ;;  %vm347_vm1 = vweird.f32 %v341_v55 }
  0xb8   :  { %v354_v63 = vor.u32 1.1754944e-38, %v353_v59  ;;  %vm352_vm3 = vcmp.eq.f32.partialorder %v351_v61, 8.507059e+37 }
  0xbc   :  { %v580_v56 = vpop.eup %579 }
  0xbd   :  { %v343_v57 = vmul.f32 %v580_v56, %v341_v55  ;;  %vm348_vm0 = vweird.f32 %v580_v56 }
  0xbe   :  { %vm349_vm2 = vmor %vm347_vm1, %vm348_vm0 }
  0xbf   :  { %v344_v58 = vsub.f32 1.0, %v343_v57 }
  0xc1   :  { %v345_v60 = vmul.f32 %v580_v56, %v344_v58 }
  0xc3   :  { %v346_v62 = vadd.f32 %v580_v56, %v345_v60 }
  0xc5   :  { %v350_v0 = vsel %vm349_vm2, %v580_v56, %v346_v62 }
  0xc6   :  { %v355_v1 = vsel %vm352_vm3, %v354_v63, %v350_v0 }
  0xc7   :  { %v357_v2 = vmul.f32 %v355_v1, %v335_v50 }
  0xc9   :  { %v358_v3 = vpack.c.bf16 %v357_v2, %v357_v2 }
  0xcb   :  { %542 = vmatmul.msk.bf16.vlgmr.msrb.gmra.mxu0 %vm367_vm4, %v358_v3 }
 0x148   :  { %v380_v4 = vpop.f32.mrf.mxu0 }
 0x149   :  { %v543_v5 = vmul.f32 -1.442695, %v380_v4 }
 0x14b   :  { %581 = vpow2.f32 %v543_v5 }
 0x150   :  { %v382_v6 = vpop.f32.mrf.mxu0 }
 0x151   :  { %v582_v7 = vpop.eup %581 }
 0x152   :  { %v387_v8 = vadd.f32 1.0, %v582_v7 }
 0x154   :  { %583 = vrcp.f32 %v387_v8  ;;  %v399_v12 = vand.u32 2147483648, %v387_v8  ;;  %v397_v14 = vand.u32 2147483647, %v387_v8  ;;  %vm393_vm6 = vweird.f32 %v387_v8 }
 0x156   :  { %v400_v16 = vor.u32 1.1754944e-38, %v399_v12  ;;  %vm398_vm9 = vcmp.eq.f32.partialorder %v397_v14, 8.507059e+37 }
 0x15a   :  { %v584_v9 = vpop.eup %583 }
 0x15b   :  { %v389_v10 = vmul.f32 %v584_v9, %v387_v8  ;;  %vm394_vm5 = vweird.f32 %v584_v9 }
 0x15c   :  { %vm395_vm7 = vmor %vm393_vm6, %vm394_vm5 }
 0x15d   :  { %v390_v11 = vsub.f32 1.0, %v389_v10 }
 0x15f   :  { %v391_v13 = vmul.f32 %v584_v9, %v390_v11 }
 0x161   :  { %v392_v15 = vadd.f32 %v584_v9, %v391_v13 }
 0x163   :  { %v396_v17 = vsel %vm395_vm7, %v584_v9, %v392_v15 }
 0x164   :  { %v401_v18 = vsel %vm398_vm9, %v400_v16, %v396_v17 }
 0x165   :  { %404 = vst.msk [vmem:[%s713_s3] sm:$0x3] %vm403_vm8, %v401_v18 }

</bundles_post_ra>
